<compile_context>
chip_gen: v6e
topology: v6e:2x2x1
jax: 0.10.0
libtpu: 0.0.40
codegen_flags: <defaults>
</compile_context>

<pallas_src>
import jax
import jax.numpy as jnp
from jax import lax
from jax.experimental import pallas as pl
from jax.experimental.pallas import tpu as pltpu

# ---- model hyper-params (small, consistent with the module) ----------------
B = 2            # batch
L = 8            # sequence length
C_IN = 16        # input channels
DMODEL = 32      # model dim
NUM_HEAD = 8
DEPTH = DMODEL // NUM_HEAD
BL = B * L       # flattened batch*sequence           = 16
HBL = NUM_HEAD * BL  # stacked head x (batch*seq) axis = 128 (lane dense)

# Plain Python float -> lowers as a literal / wrapper constant.
NEG_FILL = float(-2 ** 32 + 1)


def _mha_kernel(x_rep_ref, wq_ref, bq_ref, wk_ref, bk_ref, wv_ref, bv_ref,
                sel_ref, mask_ref, wc_ref, bc_ref, o_ref):
    f32 = jnp.float32
    x_rep = x_rep_ref[...]          # (HBL, C_IN)  = 8 stacked copies of x
    sel = sel_ref[...]              # (HBL, DMODEL) head-selection 0/1 mask

    # ---- Q for the BL real rows (rows [0, BL) of x_rep are the un-tiled x) ----
    q = jnp.dot(x_rep[:BL, :], wq_ref[...],
                preferred_element_type=f32) + bq_ref[...]          # (BL, DMODEL)

    # ---- head-block-diagonal K / V -------------------------------------------
    # Row h*BL+j holds K[j,:] (resp. V[j,:]) with only head-h columns kept, so
    # one dense score matmul and one dense value matmul replace 8 tiny
    # per-head matmuls and both head transposes.
    k_bd = (jnp.dot(x_rep, wk_ref[...], preferred_element_type=f32)
            + bk_ref[...]) * sel                                    # (HBL, DMODEL)
    v_bd = (jnp.dot(x_rep, wv_ref[...], preferred_element_type=f32)
            + bv_ref[...]) * sel                                    # (HBL, DMODEL)

    # ---- all-head scores, lane dense: s[i, h*BL+j] = Q_h[i] . K_h[j] ----------
    s = lax.dot_general(q, k_bd, (((1,), (1,)), ((), ())),
                        preferred_element_type=f32)                 # (BL, HBL)
    # Additive "casual" (upper-triangular, per torch.triu) + same-batch mask,
    # precomputed as a constant in the wrapper.
    s = s + mask_ref[...]

    # ---- per-head (segmented) softmax over each BL-column block ---------------
    # Subtracting the per-row global max is valid for every segment (softmax is
    # shift invariant per row); kept scores are O(1) here so no segment
    # underflows, and masked entries become exactly 0 after exp.
    s = s - jnp.max(s, axis=-1, keepdims=True)
    p = jnp.exp(s)                                                  # (BL, HBL)

    # num[i, d] = sum_j p[i, head(d)*BL + j] * V[j, d]   (merged-head output)
    # den[i, d] = sum_j p[i, head(d)*BL + j]             (per-head softmax sum)
    num = jnp.dot(p, v_bd, preferred_element_type=f32)              # (BL, DMODEL)
    den = jnp.dot(p, sel, preferred_element_type=f32)               # (BL, DMODEL)
    out = num * pl.reciprocal(den, approx=True)

    # ---- output projection; 1/sqrt(depth) already folded into wc --------------
    y = jnp.dot(out, wc_ref[...], preferred_element_type=f32) + bc_ref[...]
    o_ref[...] = y.astype(o_ref.dtype)


def prepare_params(params):
    """One-time prep: fold scale into wc, build constant masks (out of per-call path)."""
    # Head-selection mask: sel[h*BL + j, d] = 1 iff column d belongs to head h.
    row_head = jnp.arange(HBL) // BL
    col_head = jnp.arange(DMODEL) // DEPTH
    sel = (row_head[:, None] == col_head[None, :]).astype(jnp.float32)   # (HBL, DMODEL)

    # Additive logit mask over the stacked (BL, H*BL) scores: keep key j for
    # query i iff same batch and j's position >= i's position (torch.triu
    # semantics of the module), else NEG_FILL.
    qi = jnp.arange(BL)
    kj = jnp.arange(HBL) % BL
    same_batch = (qi[:, None] // L) == (kj[None, :] // L)
    upper_tri = (kj[None, :] % L) >= (qi[:, None] % L)
    mask = jnp.where(same_batch & upper_tri, 0.0, NEG_FILL).astype(jnp.float32)

    return dict(
        wq=params["wq"], bq=params["bq"],
        wk=params["wk"], bk=params["bk"],
        wv=params["wv"], bv=params["bv"],
        wc=params["wc"] * (1.0 / (DEPTH ** 0.5)),  # post-softmax scale folded in
        bc=params["bc"],
        sel=sel, mask=mask)


def _mha_forward(x, prep):
    """x: (B, L, C_IN) float32. prep: output of prepare_params."""
    xf = x.reshape(BL, C_IN)
    # Layout plumbing in the wrapper (cheap XLA op): 8 stacked copies of x so
    # the kernel builds head-block-diagonal K/V with plain matmuls and no
    # in-kernel transpose/relayout.
    x_rep = jnp.tile(xf, (NUM_HEAD, 1))                     # (HBL, C_IN)

    vmem = pl.BlockSpec(memory_space=pltpu.MemorySpace.VMEM)
    out = pl.pallas_call(
        _mha_kernel,
        out_shape=jax.ShapeDtypeStruct((BL, DMODEL), jnp.float32),
        in_specs=[vmem] * 11,
        out_specs=vmem,
    )(x_rep, prep["wq"], prep["bq"], prep["wk"], prep["bk"],
      prep["wv"], prep["bv"], prep["sel"], prep["mask"],
      prep["wc"], prep["bc"])
    return out.reshape(B, L, DMODEL)


mha_pallas = jax.jit(_mha_forward)


def mha_reference(x, params):
    """Pure-JAX reference mirroring the PyTorch forward (casual=True, eval)."""
    q = x @ params["wq"] + params["bq"][0]
    k = x @ params["wk"] + params["bk"][0]
    v = x @ params["wv"] + params["bv"][0]

    def split_heads(t):                                   # (B, L, D) -> (B, H, L, d)
        return t.reshape(B, L, NUM_HEAD, DEPTH).transpose(0, 2, 1, 3)

    qh, kh, vh = split_heads(q), split_heads(k), split_heads(v)
    att = jnp.einsum("bhqd,bhkd->bhqk", qh, kh)
    row = lax.broadcasted_iota(jnp.int32, (L, L), 0)
    col = lax.broadcasted_iota(jnp.int32, (L, L), 1)
    att = jnp.where(col >= row, att, NEG_FILL)
    att = jax.nn.softmax(att, axis=-1)
    out = jnp.einsum("bhqk,bhkd->bhqd", att, vh) / (DEPTH ** 0.5)
    out = out.transpose(0, 2, 1, 3).reshape(B, L, DMODEL)
    return out @ params["wc"] + params["bc"][0]


def init_params(key):
    """Deterministic nn.Linear-style init; weights stored as (in, out)."""
    ks = jax.random.split(key, 8)

    def linear(kw, kb, fan_in, fan_out):
        bound = 1.0 / (fan_in ** 0.5)
        w = jax.random.uniform(kw, (fan_in, fan_out), jnp.float32, -bound, bound)
        b = jax.random.uniform(kb, (1, fan_out), jnp.float32, -bound, bound)
        return w, b

    wq, bq = linear(ks[0], ks[1], C_IN, DMODEL)
    wk, bk = linear(ks[2], ks[3], C_IN, DMODEL)
    wv, bv = linear(ks[4], ks[5], C_IN, DMODEL)
    wc, bc = linear(ks[6], ks[7], DMODEL, DMODEL)
    return dict(wq=wq, bq=bq, wk=wk, bk=bk, wv=wv, bv=bv, wc=wc, bc=bc)


if __name__ == "__main__":
    key = jax.random.PRNGKey(0)
    k_x, k_p = jax.random.split(key)
    x = jax.random.normal(k_x, (B, L, C_IN), jnp.float32)
    params = init_params(k_p)
    prep = prepare_params(params)          # once, outside the per-call path

    out = jax.block_until_ready(mha_pallas(x, prep))
    ref = jax.block_until_ready(mha_reference(x, params))

    assert out.shape == (B, L, DMODEL), out.shape
    # Tolerance accounts for TPU default (bf16-pass) matmul precision in both
    # the kernel and the XLA reference, plus the approx EUP reciprocal.
    err = float(jnp.max(jnp.abs(out - ref)))
    assert err < 2e-2, err
    print("KERNEL_OK")
</pallas_src>

<mosaic_0001>
module attributes {stable_mosaic.version = 11 : i64} {
  func.func @_mha_kernel(%arg0: memref<128x16xf32, #tpu.memory_space<vmem>>, %arg1: memref<16x32xf32, #tpu.memory_space<vmem>>, %arg2: memref<1x32xf32, #tpu.memory_space<vmem>>, %arg3: memref<16x32xf32, #tpu.memory_space<vmem>>, %arg4: memref<1x32xf32, #tpu.memory_space<vmem>>, %arg5: memref<16x32xf32, #tpu.memory_space<vmem>>, %arg6: memref<1x32xf32, #tpu.memory_space<vmem>>, %arg7: memref<128x32xf32, #tpu.memory_space<vmem>>, %arg8: memref<16x128xf32, #tpu.memory_space<vmem>>, %arg9: memref<32x32xf32, #tpu.memory_space<vmem>>, %arg10: memref<1x32xf32, #tpu.memory_space<vmem>>, %arg11: memref<16x32xf32, #tpu.memory_space<vmem>>) attributes {dimension_semantics = [], scalar_prefetch = 0 : i64, scratch_operands = 0 : i64, tpu.core_type = #tpu.core_type<tc>} {
    %c0 = arith.constant 0 : index
    %c0_0 = arith.constant 0 : index
    %0 = vector.load %arg0[%c0, %c0_0] : memref<128x16xf32, #tpu.memory_space<vmem>>, vector<128x16xf32>
    %c0_1 = arith.constant 0 : index
    %c0_2 = arith.constant 0 : index
    %1 = vector.load %arg7[%c0_1, %c0_2] : memref<128x32xf32, #tpu.memory_space<vmem>>, vector<128x32xf32>
    %2 = vector.extract_strided_slice %0 {offsets = [0, 0], sizes = [16, 16], strides = [1, 1]} : vector<128x16xf32> to vector<16x16xf32>
    %c0_3 = arith.constant 0 : index
    %c0_4 = arith.constant 0 : index
    %3 = vector.load %arg1[%c0_3, %c0_4] : memref<16x32xf32, #tpu.memory_space<vmem>>, vector<16x32xf32>
    %cst = arith.constant dense<0.000000e+00> : vector<16x32xf32>
    %4 = tpu.matmul %2, %3, %cst {dimension_numbers = #tpu.dot_dimension_numbers<[1], [0], [0], [1], [0, 0, 1, 1], [], []>} : vector<16x16xf32>, vector<16x32xf32>, vector<16x32xf32> -> vector<16x32xf32>
    %c0_5 = arith.constant 0 : index
    %c0_6 = arith.constant 0 : index
    %5 = vector.load %arg2[%c0_5, %c0_6] : memref<1x32xf32, #tpu.memory_space<vmem>>, vector<1x32xf32>
    %6 = vector.broadcast %5 : vector<1x32xf32> to vector<16x32xf32>
    %7 = arith.addf %4, %6 : vector<16x32xf32>
    %c0_7 = arith.constant 0 : index
    %c0_8 = arith.constant 0 : index
    %8 = vector.load %arg3[%c0_7, %c0_8] : memref<16x32xf32, #tpu.memory_space<vmem>>, vector<16x32xf32>
    %cst_9 = arith.constant dense<0.000000e+00> : vector<128x32xf32>
    %9 = tpu.matmul %0, %8, %cst_9 {dimension_numbers = #tpu.dot_dimension_numbers<[1], [0], [0], [1], [0, 0, 1, 1], [], []>} : vector<128x16xf32>, vector<16x32xf32>, vector<128x32xf32> -> vector<128x32xf32>
    %c0_10 = arith.constant 0 : index
    %c0_11 = arith.constant 0 : index
    %10 = vector.load %arg4[%c0_10, %c0_11] : memref<1x32xf32, #tpu.memory_space<vmem>>, vector<1x32xf32>
    %11 = vector.broadcast %10 : vector<1x32xf32> to vector<128x32xf32>
    %12 = arith.addf %9, %11 : vector<128x32xf32>
    %13 = arith.mulf %12, %1 : vector<128x32xf32>
    %c0_12 = arith.constant 0 : index
    %c0_13 = arith.constant 0 : index
    %14 = vector.load %arg5[%c0_12, %c0_13] : memref<16x32xf32, #tpu.memory_space<vmem>>, vector<16x32xf32>
    %cst_14 = arith.constant dense<0.000000e+00> : vector<128x32xf32>
    %15 = tpu.matmul %0, %14, %cst_14 {dimension_numbers = #tpu.dot_dimension_numbers<[1], [0], [0], [1], [0, 0, 1, 1], [], []>} : vector<128x16xf32>, vector<16x32xf32>, vector<128x32xf32> -> vector<128x32xf32>
    %c0_15 = arith.constant 0 : index
    %c0_16 = arith.constant 0 : index
    %16 = vector.load %arg6[%c0_15, %c0_16] : memref<1x32xf32, #tpu.memory_space<vmem>>, vector<1x32xf32>
    %17 = vector.broadcast %16 : vector<1x32xf32> to vector<128x32xf32>
    %18 = arith.addf %15, %17 : vector<128x32xf32>
    %19 = arith.mulf %18, %1 : vector<128x32xf32>
    %cst_17 = arith.constant dense<0.000000e+00> : vector<16x128xf32>
    %20 = tpu.matmul %7, %13, %cst_17 {dimension_numbers = #tpu.dot_dimension_numbers<[1], [1], [0], [0], [0, 0, 1, 0], [], []>} : vector<16x32xf32>, vector<128x32xf32>, vector<16x128xf32> -> vector<16x128xf32>
    %c0_18 = arith.constant 0 : index
    %c0_19 = arith.constant 0 : index
    %21 = vector.load %arg8[%c0_18, %c0_19] : memref<16x128xf32, #tpu.memory_space<vmem>>, vector<16x128xf32>
    %22 = arith.addf %20, %21 : vector<16x128xf32>
    %cst_20 = arith.constant dense<0xFF800000> : vector<16xf32>
    %23 = vector.multi_reduction <maximumf>, %22, %cst_20 [1] : vector<16x128xf32> to vector<16xf32>
    %24 = vector.shape_cast %23 : vector<16xf32> to vector<16x1xf32>
    %25 = vector.broadcast %24 : vector<16x1xf32> to vector<16x128xf32>
    %26 = arith.subf %22, %25 : vector<16x128xf32>
    %27 = math.exp %26 : vector<16x128xf32>
    %cst_21 = arith.constant dense<0.000000e+00> : vector<16x32xf32>
    %28 = tpu.matmul %27, %19, %cst_21 {dimension_numbers = #tpu.dot_dimension_numbers<[1], [0], [0], [1], [0, 0, 1, 1], [], []>} : vector<16x128xf32>, vector<128x32xf32>, vector<16x32xf32> -> vector<16x32xf32>
    %cst_22 = arith.constant dense<0.000000e+00> : vector<16x32xf32>
    %29 = tpu.matmul %27, %1, %cst_22 {dimension_numbers = #tpu.dot_dimension_numbers<[1], [0], [0], [1], [0, 0, 1, 1], [], []>} : vector<16x128xf32>, vector<128x32xf32>, vector<16x32xf32> -> vector<16x32xf32>
    %30 = tpu.reciprocal %29 {approx = true} : vector<16x32xf32> -> vector<16x32xf32>
    %31 = arith.mulf %28, %30 : vector<16x32xf32>
    %c0_23 = arith.constant 0 : index
    %c0_24 = arith.constant 0 : index
    %32 = vector.load %arg9[%c0_23, %c0_24] : memref<32x32xf32, #tpu.memory_space<vmem>>, vector<32x32xf32>
    %cst_25 = arith.constant dense<0.000000e+00> : vector<16x32xf32>
    %33 = tpu.matmul %31, %32, %cst_25 {dimension_numbers = #tpu.dot_dimension_numbers<[1], [0], [0], [1], [0, 0, 1, 1], [], []>} : vector<16x32xf32>, vector<32x32xf32>, vector<16x32xf32> -> vector<16x32xf32>
    %c0_26 = arith.constant 0 : index
    %c0_27 = arith.constant 0 : index
    %34 = vector.load %arg10[%c0_26, %c0_27] : memref<1x32xf32, #tpu.memory_space<vmem>>, vector<1x32xf32>
    %35 = vector.broadcast %34 : vector<1x32xf32> to vector<16x32xf32>
    %36 = arith.addf %33, %35 : vector<16x32xf32>
    %c0_28 = arith.constant 0 : index
    %c0_29 = arith.constant 0 : index
    %37 = vector.load %arg11[%c0_28, %c0_29] : memref<16x32xf32, #tpu.memory_space<vmem>>, vector<16x32xf32>
    tpu.vector_store %arg11[%c0_28, %c0_29], %36 {strides = array<i32>} : memref<16x32xf32, #tpu.memory_space<vmem>>, vector<16x32xf32>,
    return
  }
}

</mosaic_0001>

<bundles_post_ra>
// kernel: _mha_forward.1
= control target key start
LH: loop header
LB: loop body
LE: loop exit
PB: predicated region body
PF: predicated region fallthrough
CT: control target
= control target key end

     0   :  { %vm80_vm0 = vcmask 130048   ;;  %s1743_s0 = inlined_call_operand.vmem [shape: f32[128,16], index: 0, kind: input, shape index: {}]   ;;  %s1744_s1 = inlined_call_operand.vmem [shape: f32[16,32], index: 1, kind: input, shape index: {}]   ;;  %s1745_s2 = inlined_call_operand.vmem [shape: f32[1,32], index: 2, kind: input, shape index: {}]   ;;  %s1746_s3 = inlined_call_operand.vmem [shape: f32[16,32], index: 3, kind: input, shape index: {}]   ;;  %s1747_s4 = inlined_call_operand.vmem [shape: f32[1,32], index: 4, kind: input, shape index: {}]   ;;  %s1748_s5 = inlined_call_operand.vmem [shape: f32[16,32], index: 5, kind: input, shape index: {}]   ;;  %s1749_s6 = inlined_call_operand.vmem [shape: f32[1,32], index: 6, kind: input, shape index: {}]   ;;  %s1750_s7 = inlined_call_operand.vmem [shape: f32[128,32], index: 7, kind: input, shape index: {}]   ;;  %s1751_s8 = inlined_call_operand.vmem [shape: f32[16,128], index: 8, kind: input, shape index: {}]   ;;  %s1752_s9 = inlined_call_operand.vmem [shape: f32[32,32], index: 9, kind: input, shape index: {}]   ;;  %s1753_s10 = inlined_call_operand.vmem [shape: f32[1,32], index: 10, kind: input, shape index: {}]   ;;  %s1754_s11 = inlined_call_operand.hbm [shape: f32[16,32], index: 11, kind: output, shape index: {}]  }
   0x1   :  { %v163_v0 = vld [vmem:[%s1746_s3 + $0x8] sm:$0xff]  ;;  %v162_v1 = vld [vmem:[%s1746_s3] sm:$0xff]  ;;  %v41_v4 = vld [vmem:[%s1743_s0 + $0x10] sm:$0xff] }
   0x2   :  { %v39_v2 = vld [vmem:[%s1743_s0] sm:$0xff]  ;;  %1115 = vmatprep.subr.mxu1 %v163_v0  ;;  %v40_v3 = vld [vmem:[%s1743_s0 + $0x8] sm:$0xff]  ;;  %v42_v5 = vld [vmem:[%s1743_s0 + $0x18] sm:$0xff] }
   0x3   :  { %1119 = vmatprep.mubr.msk.f32.mxu1 %vm80_vm0, %v39_v2  ;;  %1116 = vmatpush3.msra.mxu1 %v163_v0  ;;  %v72_v6 = vld [vmem:[%s1744_s1 + $0x8] sm:$0xff]  ;;  %v71_v7 = vld [vmem:[%s1744_s1] sm:$0xff] }
   0x4   :  { %1112 = vmatprep.mubr.msk.f32.mxu0 %vm80_vm0, %v39_v2  ;;  %1117 = vmatprep.subr.mxu1 %v162_v1  ;;  %v43_v8 = vld [vmem:[%s1743_s0 + $0x20] sm:$0xff] }
   0x5   :  { %1118 = vmatpush3.msra.mxu1 %v162_v1  ;;  %1108 = vmatprep.subr.mxu0 %v72_v6 }
   0x6   :  { %1120 = vmatmul.mubr.msk.f32.vlgmr.msra.gmra.mxu1 %vm80_vm0, %v40_v3 }
   0x7   :  { %1122 = vmatprep.mubr.msk.f32.mxu1 %vm80_vm0, %v41_v4 }
   0x8   :  { %16 = vsyncpa [#allocation3], 0  ;;  %1109 = vmatpush3.msra.mxu0 %v72_v6  ;;  %v44_v9 = vld [vmem:[%s1743_s0 + $0x28] sm:$0xff]  ;;  %v45_v10 = vld [vmem:[%s1743_s0 + $0x30] sm:$0xff]  ;;  %vm546_vm1 = vcmask 261120   ;;  %s1320_s18 = smov [#allocation2]  }
   0x9   :  { %1110 = vmatprep.subr.mxu0 %v71_v7  ;;  %v46_v11 = vld [vmem:[%s1743_s0 + $0x38] sm:$0xff]  ;;  %v47_v12 = vld [vmem:[%s1743_s0 + $0x40] sm:$0xff]  ;;  %v48_v13 = vld [vmem:[%s1743_s0 + $0x48] sm:$0xff]  ;;  %s939_s1 = sshll.u32 %s1320_s18, 4  ;;  %s940_s1 = int_to_ptr.vmem [resolvable:$true] %s939_s1 }
   0xa   :  { %1123 = vmatmul.mubr.msk.f32.gmra.mxu1 %vm80_vm0, %v42_v5  ;;  %1111 = vmatpush3.msra.mxu0 %v71_v7  ;;  %v49_v14 = vld [vmem:[%s1743_s0 + $0x50] sm:$0xff]  ;;  %v50_v15 = vld [vmem:[%s1743_s0 + $0x58] sm:$0xff]  ;;  %v51_v16 = vld [vmem:[%s1743_s0 + $0x60] sm:$0xff]  ;;  %p1303_p1 = scmp.lt.s32.totalorder %s940_s1, %s940_s1 }
   0xb   :  { %1125 = vmatprep.mubr.msk.f32.mxu1 %vm80_vm0, %v43_v8  ;;  %1113 = vmatmul.mubr.msk.f32.vlgmr.msra.gmra.mxu0 %vm80_vm0, %v40_v3  ;;  %v52_v17 = vld [vmem:[%s1743_s0 + $0x68] sm:$0xff]  ;;  %v53_v18 = vld [vmem:[%s1743_s0 + $0x70] sm:$0xff]  ;;  %v54_v19 = vld [vmem:[%s1743_s0 + $0x78] sm:$0xff]  ;;  %s1298_s0 = scalar_lea.vmem %s940_s1, 256 }
   0xc   :  { %1147 = vmatprep.mubr.msk.f32.mxu0 %vm80_vm0, %v39_v2  ;;  %v375_v20 = vld [vmem:[%s1748_s5 + $0x8] sm:$0xff]  ;;  %v374_v21 = vld [vmem:[%s1748_s5] sm:$0xff]  ;;  %v1509_v42 = vld [vmem:[%s1750_s7 + $0x78] sm:$0xff]  ;;  %p1299_p0 = scmp.ne.s32.totalorder %s940_s1, %s1298_s0  ;;  %p1304_p2 = scmp.lt.s32.totalorder %s1298_s0, %s1298_s0 }
   0xd   :  { %1143 = vmatprep.subr.mxu0 %v375_v20  ;;  %v950_v25 = vld [vmem:[%s1745_s2] ss:$0 sm:$0xff]  ;;  %v1515_v45 = vld [vmem:[%s1750_s7 + $0x70] sm:$0xff]  ;;  %v1525_v51 = vld [vmem:[%s1750_s7 + $0x68] sm:$0xff] }
   0xe   :  { %1126 = vmatmul.mubr.msk.f32.gmra.mxu1 %vm80_vm0, %v44_v9  ;;  %1144 = vmatpush3.msra.mxu0 %v375_v20  ;;  %v1504_v41 = vld [vmem:[%s1747_s4] ss:$0 sm:$0xff]  ;;  %v1543_v57 = vld [vmem:[%s1750_s7 + $0x58] sm:$0xff]  ;;  %v1552_v60 = vld [vmem:[%s1750_s7 + $0x50] sm:$0xff]  ;;  %p1305_p3 = por %p1304_p2, %p1303_p1 }
   0xf   :  { %1128 = vmatprep.mubr.msk.f32.mxu1 %vm80_vm0, %v45_v10  ;;  %1145 = vmatprep.subr.mxu0 %v374_v21  ;;  %v1534_v54 = vld [vmem:[%s1750_s7 + $0x60] sm:$0xff]  ;;  %v1561_v63 = vld [vmem:[%s1750_s7 + $0x48] sm:$0xff]  ;;  %v1628_v20 = vld [vmem:[%s1750_s7 + $0x10] sm:$0xff] }
  0x10   :  { %1146 = vmatpush3.msra.mxu0 %v374_v21  ;;  %v1570_v2 = vld [vmem:[%s1750_s7 + $0x40] sm:$0xff]  ;;  %p1306_p4 = pnand %p1305_p3, %p1299_p0 }
  0x11   :  { %1148 = vmatmul.mubr.msk.f32.vlgmr.msra.gmra.mxu0 %vm80_vm0, %v40_v3 }
  0x12   :  { %1129 = vmatmul.mubr.msk.f32.gmra.mxu1 %vm80_vm0, %v46_v11  ;;  %1150 = vmatprep.mubr.msk.f32.mxu0 %vm80_vm0, %v41_v4 }
  0x13   :  { %1131 = vmatprep.mubr.msk.f32.mxu1 %vm80_vm0, %v47_v12 }
  0x15   :  { %1151 = vmatmul.mubr.msk.f32.gmra.mxu0 %vm80_vm0, %v42_v5  ;;  %v1579_v5 = vld [vmem:[%s1750_s7 + $0x38] sm:$0xff] }
  0x16   :  { %1132 = vmatmul.mubr.msk.f32.gmra.mxu1 %vm80_vm0, %v48_v13  ;;  %1153 = vmatprep.mubr.msk.f32.mxu0 %vm80_vm0, %v43_v8  ;;  %v1588_v8 = vld [vmem:[%s1750_s7 + $0x30] sm:$0xff] }
  0x17   :  { %1134 = vmatprep.mubr.msk.f32.mxu1 %vm80_vm0, %v49_v14 }
  0x19   :  { %1154 = vmatmul.mubr.msk.f32.gmra.mxu0 %vm80_vm0, %v44_v9 }
  0x1a   :  { %1135 = vmatmul.mubr.msk.f32.gmra.mxu1 %vm80_vm0, %v50_v15  ;;  %1156 = vmatprep.mubr.msk.f32.mxu0 %vm80_vm0, %v45_v10 }
  0x1b   :  { %1137 = vmatprep.mubr.msk.f32.mxu1 %vm80_vm0, %v51_v16 }
  0x1d   :  { %1157 = vmatmul.mubr.msk.f32.gmra.mxu0 %vm80_vm0, %v46_v11  ;;  %v1598_v11 = vld [vmem:[%s1750_s7 + $0x28] sm:$0xff] }
  0x1e   :  { %1138 = vmatmul.mubr.msk.f32.gmra.mxu1 %vm80_vm0, %v52_v17  ;;  %1159 = vmatprep.mubr.msk.f32.mxu0 %vm80_vm0, %v47_v12 }
  0x1f   :  { %1140 = vmatprep.mubr.msk.f32.mxu1 %vm80_vm0, %v53_v18 }
  0x21   :  { %1160 = vmatmul.mubr.msk.f32.gmra.mxu0 %vm80_vm0, %v48_v13 }
  0x22   :  { %1141 = vmatmul.mubr.msk.f32.gmra.mxu1 %vm80_vm0, %v54_v19  ;;  %1162 = vmatprep.mubr.msk.f32.mxu0 %vm80_vm0, %v49_v14  ;;  %v1608_v14 = vld [vmem:[%s1750_s7 + $0x20] sm:$0xff] }
  0x25   :  { %1163 = vmatmul.mubr.msk.f32.gmra.mxu0 %vm80_vm0, %v50_v15 }
  0x26   :  { %1165 = vmatprep.mubr.msk.f32.mxu0 %vm80_vm0, %v51_v16 }
  0x29   :  { %1166 = vmatmul.mubr.msk.f32.gmra.mxu0 %vm80_vm0, %v52_v17  ;;  %v1618_v17 = vld [vmem:[%s1750_s7 + $0x18] sm:$0xff] }
  0x2a   :  { %1168 = vmatprep.mubr.msk.f32.mxu0 %vm80_vm0, %v53_v18 }
  0x2d   :  { %1169 = vmatmul.mubr.msk.f32.gmra.mxu0 %vm80_vm0, %v54_v19 }
  0xc6   :  { %v1482_v22 = vpop.f32.mrf.mxu1 }
  0xc7   :  { %v285_v21 = vadd.f32 %v1482_v22, %v1504_v41  ;;  %v1648_v22 = vld [vmem:[%s1750_s7] sm:$0xff] }
  0xc8   :  { %v1484_v23 = vpop.f32.mrf.mxu1 }
  0xca   :  { %v1487_v24 = vpop.f32.mrf.mxu1 }
  0xcb   :  { %v1114_v27 = vpop.f32.mrf.mxu0  ;;  %v295_v15 = vadd.f32 %v1487_v24, %v1504_v41 }
  0xcc   :  { %v1492_v26 = vpop.f32.mrf.mxu1  ;;  %v1494_v28 = vadd.f32 %v1114_v27, %v950_v25  ;;  %v280_v27 = vadd.f32 %v1504_v41, %v1484_v23 }
  0xcd   :  { %v153_v30 = vpop.f32.mrf.mxu0  ;;  %v361_v18 = vmul.f32 %v295_v15, %v1618_v17  ;;  %v290_v19 = vadd.f32 %v1504_v41, %v1492_v26 }
  0xce   :  { %v1496_v29 = vpop.f32.mrf.mxu1  ;;  %v154_v31 = vadd.f32 %v950_v25, %v153_v30  ;;  %v1638_v25 = vld [vmem:[%s1750_s7 + $0x8] sm:$0xff] }
  0xcf   :  { %v305_v9 = vadd.f32 %v1496_v29, %v1504_v41  ;;  %v360_v24 = vmul.f32 %v290_v19, %v1628_v20  ;;  %v359_v26 = vmul.f32 %v285_v21, %v1638_v25  ;;  %v358_v29 = vmul.f32 %v280_v27, %v1648_v22 }
  0xd0   :  { %v1498_v32 = vpop.f32.mrf.mxu1  ;;  %1203 = vmatprep.mubr.msk.f32.mxu1 %vm546_vm1, %v154_v31 }
  0xd1   :  { %v363_v12 = vmul.f32 %v305_v9, %v1598_v11  ;;  %v300_v13 = vadd.f32 %v1504_v41, %v1498_v32  ;;  %v1658_v23 = vpop.f32.mrf.mxu0 }
  0xd2   :  { %v1130_v33 = vpop.f32.mrf.mxu1 }
  0xd3   :  { %v315_v3 = vadd.f32 %v1130_v33, %v1504_v41  ;;  %v362_v16 = vmul.f32 %v300_v13, %v1608_v14  ;;  %v1660_v30 = vpop.f32.mrf.mxu0 }
  0xd4   :  { %v309_v34 = vpop.f32.mrf.mxu1 }
  0xd5   :  { %v365_v6 = vmul.f32 %v315_v3, %v1579_v5  ;;  %v310_v7 = vadd.f32 %v1504_v41, %v309_v34  ;;  %v1152_v31 = vpop.f32.mrf.mxu0 }
  0xd6   :  { %v1133_v35 = vpop.f32.mrf.mxu1 }
  0xd7   :  { %v325_v61 = vadd.f32 %v1133_v35, %v1504_v41  ;;  %v364_v10 = vmul.f32 %v310_v7, %v1588_v8  ;;  %v459_v32 = vpop.f32.mrf.mxu0 }
  0xd8   :  { %v319_v36 = vpop.f32.mrf.mxu1 }
  0xd9   :  { %v367_v0 = vmul.f32 %v325_v61, %v1561_v63  ;;  %v320_v1 = vadd.f32 %v1504_v41, %v319_v36  ;;  %v1155_v33 = vpop.f32.mrf.mxu0 }
  0xda   :  { %v1136_v37 = vpop.f32.mrf.mxu1 }
  0xdb   :  { %v335_v55 = vadd.f32 %v1136_v37, %v1504_v41  ;;  %v366_v4 = vmul.f32 %v320_v1, %v1570_v2  ;;  %v469_v34 = vpop.f32.mrf.mxu0 }
  0xdc   :  { %v329_v38 = vpop.f32.mrf.mxu1 }
  0xdd   :  { %v369_v58 = vmul.f32 %v335_v55, %v1543_v57  ;;  %v330_v59 = vadd.f32 %v1504_v41, %v329_v38  ;;  %v1158_v35 = vpop.f32.mrf.mxu0 }
  0xde   :  { %v1139_v39 = vpop.f32.mrf.mxu1 }
  0xdf   :  { %v345_v49 = vadd.f32 %v1139_v39, %v1504_v41  ;;  %v368_v62 = vmul.f32 %v330_v59, %v1552_v60  ;;  %v479_v36 = vpop.f32.mrf.mxu0 }
  0xe0   :  { %v339_v40 = vpop.f32.mrf.mxu1 }
  0xe1   :  { %v371_v52 = vmul.f32 %v345_v49, %v1525_v51  ;;  %v340_v53 = vadd.f32 %v1504_v41, %v339_v40  ;;  %v1161_v37 = vpop.f32.mrf.mxu0 }
  0xe2   :  { %v1142_v43 = vpop.f32.mrf.mxu1 }
  0xe3   :  { %v355_v44 = vadd.f32 %v1142_v43, %v1504_v41  ;;  %v370_v56 = vmul.f32 %v340_v53, %v1534_v54  ;;  %v489_v38 = vpop.f32.mrf.mxu0  ;;  %v970_v43 = vld [vmem:[%s1749_s6] ss:$0 sm:$0xff] }
  0xe4   :  { %v349_v46 = vpop.f32.mrf.mxu1  ;;  %v495_v61 = vadd.f32 %v1161_v37, %v970_v43  ;;  %v485_v3 = vadd.f32 %v1158_v35, %v970_v43  ;;  %v475_v9 = vadd.f32 %v1155_v33, %v970_v43  ;;  %v465_v15 = vadd.f32 %v1152_v31, %v970_v43 }
  0xe5   :  { %v373_v47 = vmul.f32 %v355_v44, %v1509_v42  ;;  %v350_v48 = vadd.f32 %v1504_v41, %v349_v46  ;;  %v1164_v39 = vpop.f32.mrf.mxu0  ;;  %v455_v21 = vadd.f32 %v1658_v23, %v970_v43 }
  0xe6   :  { %v505_v53 = vadd.f32 %v1164_v39, %v970_v43 }
  0xe7   :  { %v372_v50 = vmul.f32 %v350_v48, %v1515_v45  ;;  %1171 = vmatprep.subr.msk.mxu1 %vm546_vm1, %v373_v47  ;;  %v499_v40 = vpop.f32.mrf.mxu0 }
  0xe8   :  { %1172 = vmatpush3.xpose.msk.msra.mxu1 %vm546_vm1, %v373_v47 }
  0xe9   :  { %1173 = vmatprep.subr.msk.mxu1 %vm546_vm1, %v372_v50  ;;  %v1167_v41 = vpop.f32.mrf.mxu0 }
  0xea   :  { %v515_v46 = vadd.f32 %v1167_v41, %v970_v43 }
  0xec   :  { %1174 = vmatpush3.xpose.msk.msra.mxu1 %vm546_vm1, %v372_v50  ;;  %v541_v55 = vmul.f32 %v515_v46, %v1525_v51 }
  0xed   :  { %1175 = vmatprep.subr.msk.mxu1 %vm546_vm1, %v371_v52 }
  0xf0   :  { %1176 = vmatpush3.xpose.msk.msra.mxu1 %vm546_vm1, %v371_v52 }
  0xf1   :  { %1177 = vmatprep.subr.msk.mxu1 %vm546_vm1, %v370_v56 }
  0xf4   :  { %1178 = vmatpush3.xpose.msk.msra.mxu1 %vm546_vm1, %v370_v56 }
  0xf5   :  { %1179 = vmatprep.subr.msk.mxu1 %vm546_vm1, %v369_v58 }
  0xf8   :  { %1180 = vmatpush3.xpose.msk.msra.mxu1 %vm546_vm1, %v369_v58  ;;  %v500_v58 = vadd.f32 %v970_v43, %v499_v40 }
  0xf9   :  { %1181 = vmatprep.subr.msk.mxu1 %vm546_vm1, %v368_v62 }
  0xfa   :  { %v538_v1 = vmul.f32 %v500_v58, %v1552_v60 }
  0xfc   :  { %1182 = vmatpush3.xpose.msk.msra.mxu1 %vm546_vm1, %v368_v62  ;;  %v539_v62 = vmul.f32 %v505_v53, %v1543_v57 }
  0xfd   :  { %1183 = vmatprep.subr.msk.mxu1 %vm546_vm1, %v367_v0 }
 0x100   :  { %1184 = vmatpush3.xpose.msk.msra.mxu1 %vm546_vm1, %v367_v0  ;;  %v490_v0 = vadd.f32 %v970_v43, %v489_v38 }
 0x101   :  { %1185 = vmatprep.subr.msk.mxu1 %vm546_vm1, %v366_v4 }
 0x102   :  { %v536_v7 = vmul.f32 %v490_v0, %v1570_v2 }
 0x104   :  { %1186 = vmatpush3.xpose.msk.msra.mxu1 %vm546_vm1, %v366_v4  ;;  %v537_v4 = vmul.f32 %v495_v61, %v1561_v63 }
 0x105   :  { %1187 = vmatprep.subr.msk.mxu1 %vm546_vm1, %v365_v6 }
 0x108   :  { %1188 = vmatpush3.xpose.msk.msra.mxu1 %vm546_vm1, %v365_v6  ;;  %v480_v6 = vadd.f32 %v970_v43, %v479_v36 }
 0x109   :  { %1189 = vmatprep.subr.msk.mxu1 %vm546_vm1, %v364_v10 }
 0x10a   :  { %v534_v13 = vmul.f32 %v480_v6, %v1588_v8 }
 0x10c   :  { %1190 = vmatpush3.xpose.msk.msra.mxu1 %vm546_vm1, %v364_v10  ;;  %v535_v10 = vmul.f32 %v485_v3, %v1579_v5 }
 0x10d   :  { %1191 = vmatprep.subr.msk.mxu1 %vm546_vm1, %v363_v12 }
 0x110   :  { %1192 = vmatpush3.xpose.msk.msra.mxu1 %vm546_vm1, %v363_v12  ;;  %v470_v12 = vadd.f32 %v970_v43, %v469_v34  ;;  %v545_v34 = vld [vmem:[%s1751_s8 + $0x8] sm:$0xff] }
 0x111   :  { %1193 = vmatprep.subr.msk.mxu1 %vm546_vm1, %v362_v16 }
 0x112   :  { %v532_v19 = vmul.f32 %v470_v12, %v1608_v14 }
 0x114   :  { %1194 = vmatpush3.xpose.msk.msra.mxu1 %vm546_vm1, %v362_v16  ;;  %v533_v16 = vmul.f32 %v475_v9, %v1598_v11 }
 0x115   :  { %1195 = vmatprep.subr.msk.mxu1 %vm546_vm1, %v361_v18 }
 0x118   :  { %1196 = vmatpush3.xpose.msk.msra.mxu1 %vm546_vm1, %v361_v18  ;;  %v460_v18 = vadd.f32 %v970_v43, %v459_v32 }
 0x119   :  { %1197 = vmatprep.subr.msk.mxu1 %vm546_vm1, %v360_v24 }
 0x11a   :  { %v530_v27 = vmul.f32 %v460_v18, %v1628_v20 }
 0x11c   :  { %1198 = vmatpush3.xpose.msk.msra.mxu1 %vm546_vm1, %v360_v24  ;;  %v531_v24 = vmul.f32 %v465_v15, %v1618_v17 }
 0x11d   :  { %1199 = vmatprep.subr.msk.mxu1 %vm546_vm1, %v359_v26 }
 0x120   :  { %1200 = vmatpush3.xpose.msk.msra.mxu1 %vm546_vm1, %v359_v26  ;;  %v450_v26 = vadd.f32 %v970_v43, %v1660_v30  ;;  %v544_v30 = vld [vmem:[%s1751_s8] sm:$0xff] }
 0x121   :  { %1201 = vmatprep.subr.msk.mxu1 %vm546_vm1, %v358_v29 }
 0x122   :  { %v528_v31 = vmul.f32 %v450_v26, %v1648_v22 }
 0x124   :  { %1202 = vmatpush3.xpose.msk.msra.mxu1 %vm546_vm1, %v358_v29  ;;  %v529_v29 = vmul.f32 %v455_v21, %v1638_v25 }
 0x127   :  { %1204 = vmatmul.mubr.msk.f32.vlgmr.msra.gmra.mxu1 %vm546_vm1, %v1494_v28  ;;  %v509_v28 = vpop.f32.mrf.mxu0 }
 0x128   :  { %v510_v49 = vadd.f32 %v970_v43, %v509_v28 }
 0x129   :  { %v1170_v44 = vpop.f32.mrf.mxu0 }
 0x12a   :  { %v525_v47 = vadd.f32 %v1170_v44, %v970_v43  ;;  %v540_v59 = vmul.f32 %v510_v49, %v1534_v54 }
 0x12b   :  { %v519_v48 = vpop.f32.mrf.mxu0 }
 0x12c   :  { %v543_v50 = vmul.f32 %v525_v47, %v1509_v42  ;;  %v520_v52 = vadd.f32 %v970_v43, %v519_v48 }
 0x12e   :  { %v542_v56 = vmul.f32 %v520_v52, %v1515_v45  ;;  %1206 = vmatprep.subr.mxu0 %v543_v50 }
 0x12f   :  { %1207 = vmatpush3.msra.mxu0 %v543_v50 }
 0x130   :  { %1208 = vmatprep.subr.mxu0 %v542_v56 }
 0x131   :  { %1209 = vmatpush3.msra.mxu0 %v542_v56 }
 0x132   :  { %1210 = vmatprep.subr.mxu0 %v541_v55 }
 0x133   :  { %1211 = vmatpush3.msra.mxu0 %v541_v55 }
 0x134   :  { %1212 = vmatprep.subr.mxu0 %v540_v59 }
 0x135   :  { %1213 = vmatpush3.msra.mxu0 %v540_v59 }
 0x136   :  { %1214 = vmatprep.subr.mxu0 %v539_v62 }
 0x137   :  { %1215 = vmatpush3.msra.mxu0 %v539_v62 }
 0x138   :  { %1216 = vmatprep.subr.mxu0 %v538_v1 }
 0x139   :  { %1217 = vmatpush3.msra.mxu0 %v538_v1 }
 0x13a   :  { %1218 = vmatprep.subr.mxu0 %v537_v4 }
 0x13b   :  { %1219 = vmatpush3.msra.mxu0 %v537_v4 }
 0x13c   :  { %1220 = vmatprep.subr.mxu0 %v536_v7 }
 0x13d   :  { %1221 = vmatpush3.msra.mxu0 %v536_v7 }
 0x13e   :  { %1222 = vmatprep.subr.mxu0 %v535_v10 }
 0x13f   :  { %1223 = vmatpush3.msra.mxu0 %v535_v10 }
 0x140   :  { %1224 = vmatprep.subr.mxu0 %v534_v13 }
 0x141   :  { %1225 = vmatpush3.msra.mxu0 %v534_v13 }
 0x142   :  { %1226 = vmatprep.subr.mxu0 %v533_v16 }
 0x143   :  { %1227 = vmatpush3.msra.mxu0 %v533_v16 }
 0x144   :  { %1228 = vmatprep.subr.mxu0 %v532_v19 }
 0x145   :  { %1229 = vmatpush3.msra.mxu0 %v532_v19 }
 0x146   :  { %1230 = vmatprep.subr.mxu0 %v531_v24 }
 0x147   :  { %1231 = vmatpush3.msra.mxu0 %v531_v24 }
 0x148   :  { %1232 = vmatprep.subr.mxu0 %v530_v27 }
 0x149   :  { %1233 = vmatpush3.msra.mxu0 %v530_v27 }
 0x14a   :  { %1234 = vmatprep.subr.mxu0 %v529_v29 }
 0x14b   :  { %1235 = vmatpush3.msra.mxu0 %v529_v29 }
 0x14c   :  { %1236 = vmatprep.subr.mxu0 %v528_v31 }
 0x14d   :  { %1237 = vmatpush3.msra.mxu0 %v528_v31 }
 0x14e   :  { %1241 = vmatprep.subr.mxu0 %v1509_v42 }
 0x1e7   :  { %v1205_v23 = vpop.f32.mrf.mxu1 }
 0x1e8   :  { %v673_v35 = vadd.f32 %v1205_v23, %v545_v34 }
 0x1e9   :  { %v667_v32 = vpop.f32.mrf.mxu1 }
 0x1ea   :  { %v668_v33 = vadd.f32 %v667_v32, %v544_v30 }
 0x1ec   :  { %676 = vmax.xlane.f32.xlu0 %v668_v33 }
 0x1f0   :  { %678 = vmax.xlane.f32.xlu0 %v673_v35 }
 0x275   :  { %v677_v36 = vpop.xlane.xlu0 %676 }
 0x276   :  { %v680_v37 = vsub.f32 %v668_v33, %v677_v36 }
 0x278   :  { %v682_v38 = vmul.f32 1.442695, %v680_v37 }
 0x279   :  { %v679_v39 = vpop.xlane.xlu0 %678 }
 0x27a   :  { %1290 = vpow2.f32 %v682_v38  ;;  %v681_v40 = vsub.f32 %v673_v35, %v679_v39 }
 0x27c   :  { %v684_v41 = vmul.f32 1.442695, %v681_v40 }
 0x27e   :  { %1292 = vpow2.f32 %v684_v41 }
 0x287   :  { %v1291_v43 = vpop.eup %1290 }
 0x288   :  { %1238 = vmatprep.mubr.f32.mxu0 %v1291_v43 }
 0x28b   :  { %v1293_v28 = vpop.eup %1292 }
 0x28c   :  { %1239 = vmatmul.mubr.f32.vlgmr.msra.gmra.mxu0 %v1293_v28 }
 0x28d   :  { %1242 = vmatpush3.msra.mxu0 %v1509_v42  ;;  %1273 = vmatprep.mubr.f32.mxu0 %v1291_v43  ;;  %v843_v42 = vld [vmem:[%s1752_s9 + $0x18] sm:$0xff] }
 0x28e   :  { %1243 = vmatprep.subr.mxu0 %v1515_v45  ;;  %1276 = vmatprep.subr.mxu1 %v843_v42 }
 0x28f   :  { %1244 = vmatpush3.msra.mxu0 %v1515_v45  ;;  %v842_v45 = vld [vmem:[%s1752_s9 + $0x10] sm:$0xff]  ;;  %1277 = vmatpush3.msra.mxu1 %v843_v42 }
 0x290   :  { %1245 = vmatprep.subr.mxu0 %v1525_v51  ;;  %1278 = vmatprep.subr.mxu1 %v842_v45 }
 0x291   :  { %1246 = vmatpush3.msra.mxu0 %v1525_v51  ;;  %v841_v51 = vld [vmem:[%s1752_s9 + $0x8] sm:$0xff]  ;;  %1279 = vmatpush3.msra.mxu1 %v842_v45 }
 0x292   :  { %1247 = vmatprep.subr.mxu0 %v1534_v54  ;;  %1280 = vmatprep.subr.mxu1 %v841_v51 }
 0x293   :  { %1248 = vmatpush3.msra.mxu0 %v1534_v54  ;;  %v840_v54 = vld [vmem:[%s1752_s9] sm:$0xff]  ;;  %1281 = vmatpush3.msra.mxu1 %v841_v51 }
 0x294   :  { %1249 = vmatprep.subr.mxu0 %v1543_v57  ;;  %1282 = vmatprep.subr.mxu1 %v840_v54 }
 0x295   :  { %1250 = vmatpush3.msra.mxu0 %v1543_v57  ;;  %1283 = vmatpush3.msra.mxu1 %v840_v54 }
 0x296   :  { %1251 = vmatprep.subr.mxu0 %v1552_v60 }
 0x297   :  { %1252 = vmatpush3.msra.mxu0 %v1552_v60 }
 0x298   :  { %1253 = vmatprep.subr.mxu0 %v1561_v63 }
 0x299   :  { %1254 = vmatpush3.msra.mxu0 %v1561_v63 }
 0x29a   :  { %1255 = vmatprep.subr.mxu0 %v1570_v2 }
 0x29b   :  { %1256 = vmatpush3.msra.mxu0 %v1570_v2 }
 0x29c   :  { %1257 = vmatprep.subr.mxu0 %v1579_v5 }
 0x29d   :  { %1258 = vmatpush3.msra.mxu0 %v1579_v5 }
 0x29e   :  { %1259 = vmatprep.subr.mxu0 %v1588_v8 }
 0x29f   :  { %1260 = vmatpush3.msra.mxu0 %v1588_v8 }
 0x2a0   :  { %1261 = vmatprep.subr.mxu0 %v1598_v11 }
 0x2a1   :  { %1262 = vmatpush3.msra.mxu0 %v1598_v11 }
 0x2a2   :  { %1263 = vmatprep.subr.mxu0 %v1608_v14 }
 0x2a3   :  { %1264 = vmatpush3.msra.mxu0 %v1608_v14 }
 0x2a4   :  { %1265 = vmatprep.subr.mxu0 %v1618_v17 }
 0x2a5   :  { %1266 = vmatpush3.msra.mxu0 %v1618_v17  ;;  %v1005_v17 = vld [vmem:[%s1753_s10] ss:$0 sm:$0xff] }
 0x2a6   :  { %1267 = vmatprep.subr.mxu0 %v1628_v20 }
 0x2a7   :  { %1268 = vmatpush3.msra.mxu0 %v1628_v20 }
 0x2a8   :  { %1269 = vmatprep.subr.mxu0 %v1638_v25 }
 0x2a9   :  { %1270 = vmatpush3.msra.mxu0 %v1638_v25 }
 0x2aa   :  { %1271 = vmatprep.subr.mxu0 %v1648_v22 }
 0x2ab   :  { %1272 = vmatpush3.msra.mxu0 %v1648_v22 }
 0x2ac   :  { %1274 = vmatmul.mubr.f32.vlgmr.msra.gmra.mxu0 %v1293_v28 }
 0x34c   :  { %v1240_v57 = vpop.f32.mrf.mxu0 }
 0x34e   :  { %v752_v60 = vpop.f32.mrf.mxu0 }
 0x36c   :  { %v1275_v63 = vpop.f32.mrf.mxu0 }
 0x36d   :  { %1294 = vrcp.f32 %v1275_v63 }
 0x36e   :  { %v827_v2 = vpop.f32.mrf.mxu0 }
 0x36f   :  { %1296 = vrcp.f32 %v827_v2 }
 0x37a   :  { %v1295_v5 = vpop.eup %1294 }
 0x37b   :  { %v839_v14 = vmul.f32 %v1295_v5, %v1240_v57 }
 0x37c   :  { %v1297_v8 = vpop.eup %1296 }
 0x37d   :  { %v838_v11 = vmul.f32 %v1297_v8, %v752_v60 }
 0x37f   :  { %1284 = vmatprep.mubr.msk.f32.mxu1 %vm546_vm1, %v838_v11 }
 0x380   :  { %1285 = vmatmul.mubr.msk.f32.vlgmr.msra.gmra.mxu1 %vm546_vm1, %v839_v14 }
 0x440   :  { %v1286_v20 = vpop.f32.mrf.mxu1 }
 0x441   :  { %v929_v25 = vadd.f32 %v1286_v20, %v1005_v17 }
 0x442   :  { %v923_v22 = vpop.f32.mrf.mxu1 }
 0x443   :  { %933 = vst.msk [vmem:[#allocation2 + $0x8] sm:$0xff] %vm546_vm1, %v929_v25  ;;  %v924_v44 = vadd.f32 %v1005_v17, %v923_v22 }
 0x445   :  { %932 = vst.msk [vmem:[#allocation2] sm:$0xff] %vm546_vm1, %v924_v44 }
 0x446   :  { %1309 = shalt.err (!%p1306_p4)
}
 0x447   :  { %s1321_s5 = smov 128   ;;  %s1322_s10 = smov 8  }
 0x448   :  { %945 = dma.vmem_to_hbm [thread:$0]  %s940_s1, 256, %s1754_s11, [#allocation3], %s1321_s5, %s1321_s5, %s1322_s10  }
 0x449   :  { %1318 = dma.done.wait [#allocation3], 256  }
 0x44a   :  { %1319 = vsyncadd [#allocation3], 4294967040 }
 0x44b   :  { %949 = vsyncpa [#allocation3], 1 }

</bundles_post_ra>
